<compile_context>
chip_gen: v6e
topology: v6e:2x2x1
jax: 0.10.0
libtpu: 0.0.40
codegen_flags: <defaults>
</compile_context>

<pallas_src>
import functools

import jax
import jax.numpy as jnp
from jax.experimental import pallas as pl
from jax.experimental.pallas import tpu as pltpu


# --------------------------------------------------------------------------
# Pallas kernel
# --------------------------------------------------------------------------
def _dmaf_kernel(x1_ref, x2_ref, o1_ref, o2_ref, *, inv_l):
    """Fused: row-mean(x1 - x2), tanh, re-weight both outputs."""
    x1 = x1_ref[...]                                                # (TM, L), input dtype
    x2 = x2_ref[...]                                                # (TM, L), input dtype
    # Row mean of (x1 - x2) via two small row sums (f32 accumulation); avoids
    # keeping a (TM, L) difference live across the whole reduction.
    s1 = jnp.sum(x1, axis=-1, keepdims=True, dtype=jnp.float32)     # (TM, 1)
    s2 = jnp.sum(x2, axis=-1, keepdims=True, dtype=jnp.float32)     # (TM, 1)
    w_vis = jnp.tanh((s1 - s2) * inv_l)                             # tanh(mean(x1 - x2))
    # tanh is odd -> w_ir = -w_vis, and both outputs equal (x1 - x2) * (-w_vis).
    neg_w = (-w_vis).astype(x1.dtype)                               # negate only the (TM, 1) weight
    out = (x1 - x2) * neg_w                                         # single streamed product
    o1_ref[...] = out.astype(o1_ref.dtype)                          # x1_weight
    o2_ref[...] = out.astype(o2_ref.dtype)                          # x2_weight


# --------------------------------------------------------------------------
# Wrapper
# --------------------------------------------------------------------------
def dmaf_pallas(x, tm=2048):
    """x: (x1, x2), each (N, C, H, W). Returns (x1_weight, x2_weight)."""
    x1, x2 = x[0], x[1]
    assert x1.shape == x2.shape and x1.ndim == 4
    N, C, H, W = x1.shape
    M, L = N * C, H * W
    itemsize = jnp.dtype(x1.dtype).itemsize

    # Sublane multiple depends on dtype packing: 8 rows (f32), 16 (bf16), 32 (int8/fp8).
    sub = max(8, 32 // itemsize)

    # Per-generation VMEM capacity (v5e/v6e: 128 MiB, v7x: 64 MiB); use ~60% of it
    # for this kernel's pipeline, leaving headroom for the compiler.
    try:
        vmem_cap = int(getattr(pltpu.get_tpu_info(), "vmem_capacity_bytes",
                               64 * 1024 * 1024))
    except Exception:
        vmem_cap = 64 * 1024 * 1024
    vmem_budget = (vmem_cap * 3) // 5

    # Resident tiles per grid step: 2 inputs + 2 outputs, each double-buffered by the
    # Pallas pipeline (8 tiles), plus ~2 tiles of elementwise temporaries.
    tiles_resident = 10
    bytes_per_row = L * itemsize
    max_rows = max(sub, vmem_budget // (tiles_resident * bytes_per_row))
    max_rows = max(sub, (max_rows // sub) * sub)
    # TODO(synk): for extreme H*W (a single sub-row slab of ~10 tiles exceeding VMEM),
    # add an L-tiled two-pass fallback (accumulate row sums, then apply the weights).

    tm = min(tm, max_rows)
    if tm >= M:
        if M > sub:
            # Never collapse the grid to a single block: >=2 (prefer 4) row blocks keeps
            # the DMA pipeline overlapped and lets v7x shard across its 2 TensorCores.
            n_blocks = 4 if M >= 4 * sub else 2
            tm = max(sub, (pl.cdiv(M, n_blocks) // sub) * sub)
        else:
            tm = M                           # too few rows to split; block = full M
    else:
        tm = max(sub, (tm // sub) * sub)     # sublane-aligned; last block may be partial

    grid = (pl.cdiv(M, tm),)
    x1f = x1.reshape(M, L)
    x2f = x2.reshape(M, L)

    row_spec = pl.BlockSpec((tm, L), lambda i: (i, 0))
    step_bytes = tiles_resident * tm * L * itemsize
    vmem_limit = int(min(max(16 << 20, step_bytes + (2 << 20)), vmem_cap))
    cost = pl.CostEstimate(
        flops=4 * M * L,                      # 2 row-sum adds + sub + mul per element
        transcendentals=M,                    # one tanh per (n, c) row
        bytes_accessed=4 * M * L * itemsize,  # 2 reads + 2 writes
    )

    o1f, o2f = pl.pallas_call(
        functools.partial(_dmaf_kernel, inv_l=float(1.0 / L)),
        out_shape=(jax.ShapeDtypeStruct((M, L), x1.dtype),
                   jax.ShapeDtypeStruct((M, L), x2.dtype)),
        grid_spec=pltpu.PrefetchScalarGridSpec(
            num_scalar_prefetch=0,
            grid=grid,
            in_specs=[row_spec, row_spec],
            out_specs=(row_spec, row_spec),
        ),
        compiler_params=pltpu.CompilerParams(
            dimension_semantics=("parallel",),
            vmem_limit_bytes=vmem_limit,
        ),
        cost_estimate=cost,
    )(x1f, x2f)

    return o1f.reshape(N, C, H, W), o2f.reshape(N, C, H, W)


# --------------------------------------------------------------------------
# Pure-JAX reference (for correctness check)
# --------------------------------------------------------------------------
def dmaf_ref(x1, x2):
    d = x1 - x2
    w_vis = jnp.tanh(jnp.mean(d, axis=(2, 3), keepdims=True))
    w_ir = jnp.tanh(jnp.mean(-d, axis=(2, 3), keepdims=True))
    return d * w_ir, (-d) * w_vis


# --------------------------------------------------------------------------
if __name__ == "__main__":
    key = jax.random.PRNGKey(0)
    k1, k2 = jax.random.split(key)

    N, C, H, W = 2, 4, 16, 16
    x1 = jax.random.normal(k1, (N, C, H, W), jnp.float32)
    x2 = jax.random.normal(k2, (N, C, H, W), jnp.float32)

    o1, o2 = dmaf_pallas((x1, x2))
    o1 = jax.block_until_ready(o1)
    o2 = jax.block_until_ready(o2)

    r1, r2 = dmaf_ref(x1, x2)
    assert o1.shape == r1.shape == (N, C, H, W)
    assert o2.shape == r2.shape == (N, C, H, W)
    max_err = max(float(jnp.max(jnp.abs(o1 - r1))),
                  float(jnp.max(jnp.abs(o2 - r2))))
    assert max_err < 1e-5, f"max abs err {max_err}"
    print("KERNEL_OK")
</pallas_src>

<mosaic_0001>
module attributes {stable_mosaic.version = 11 : i64} {
  func.func @_dmaf_kernel(%arg0: i32, %arg1: memref<8x256xf32, #tpu.memory_space<vmem>>, %arg2: memref<8x256xf32, #tpu.memory_space<vmem>>, %arg3: memref<8x256xf32, #tpu.memory_space<vmem>>, %arg4: memref<8x256xf32, #tpu.memory_space<vmem>>) attributes {dimension_semantics = [#tpu.dimension_semantics<parallel>], iteration_bounds = array<i64: 1>, scalar_prefetch = 0 : i64, scratch_operands = 0 : i64, tpu.core_type = #tpu.core_type<tc>, window_params = [{transform_indices = @transform_0, window_bounds = array<i64: 8, 256>}, {transform_indices = @transform_1, window_bounds = array<i64: 8, 256>}, {transform_indices = @transform_2, window_bounds = array<i64: 8, 256>}, {transform_indices = @transform_3, window_bounds = array<i64: 8, 256>}]} {
    %c0 = arith.constant 0 : index
    %c0_0 = arith.constant 0 : index
    %0 = vector.load %arg1[%c0, %c0_0] : memref<8x256xf32, #tpu.memory_space<vmem>>, vector<8x256xf32>
    %c0_1 = arith.constant 0 : index
    %c0_2 = arith.constant 0 : index
    %1 = vector.load %arg2[%c0_1, %c0_2] : memref<8x256xf32, #tpu.memory_space<vmem>>, vector<8x256xf32>
    %cst = arith.constant dense<0.000000e+00> : vector<8xf32>
    %2 = vector.multi_reduction <add>, %0, %cst [1] : vector<8x256xf32> to vector<8xf32>
    %3 = vector.shape_cast %2 : vector<8xf32> to vector<8x1xf32>
    %cst_3 = arith.constant dense<0.000000e+00> : vector<8xf32>
    %4 = vector.multi_reduction <add>, %1, %cst_3 [1] : vector<8x256xf32> to vector<8xf32>
    %5 = vector.shape_cast %4 : vector<8xf32> to vector<8x1xf32>
    %6 = arith.subf %3, %5 : vector<8x1xf32>
    %cst_4 = arith.constant 3.906250e-03 : f32
    %7 = vector.broadcast %cst_4 : f32 to vector<8x1xf32>
    %8 = arith.mulf %6, %7 : vector<8x1xf32>
    %9 = math.tanh %8 : vector<8x1xf32>
    %cst_5 = arith.constant 0.000000e+00 : f32
    %10 = vector.broadcast %cst_5 : f32 to vector<8x1xf32>
    %11 = arith.subf %10, %9 : vector<8x1xf32>
    %12 = arith.subf %0, %1 : vector<8x256xf32>
    %13 = vector.broadcast %11 : vector<8x1xf32> to vector<8x256xf32>
    %14 = arith.mulf %12, %13 : vector<8x256xf32>
    %c0_6 = arith.constant 0 : index
    %c0_7 = arith.constant 0 : index
    %15 = vector.load %arg3[%c0_6, %c0_7] : memref<8x256xf32, #tpu.memory_space<vmem>>, vector<8x256xf32>
    tpu.vector_store %arg3[%c0_6, %c0_7], %14 {strides = array<i32>} : memref<8x256xf32, #tpu.memory_space<vmem>>, vector<8x256xf32>,
    %c0_8 = arith.constant 0 : index
    %c0_9 = arith.constant 0 : index
    %16 = vector.load %arg4[%c0_8, %c0_9] : memref<8x256xf32, #tpu.memory_space<vmem>>, vector<8x256xf32>
    tpu.vector_store %arg4[%c0_8, %c0_9], %14 {strides = array<i32>} : memref<8x256xf32, #tpu.memory_space<vmem>>, vector<8x256xf32>,
    return
  }
  func.func @transform_0(%arg0: i32) -> (i32, i32) {
    %c0_i32 = arith.constant 0 : i32
    %c0_i32_0 = arith.constant 0 : i32
    return %arg0, %c0_i32 : i32, i32
  }
  func.func @transform_1(%arg0: i32) -> (i32, i32) {
    %c0_i32 = arith.constant 0 : i32
    %c0_i32_0 = arith.constant 0 : i32
    return %arg0, %c0_i32 : i32, i32
  }
  func.func @transform_2(%arg0: i32) -> (i32, i32) {
    %c0_i32 = arith.constant 0 : i32
    %c0_i32_0 = arith.constant 0 : i32
    return %arg0, %c0_i32 : i32, i32
  }
  func.func @transform_3(%arg0: i32) -> (i32, i32) {
    %c0_i32 = arith.constant 0 : i32
    %c0_i32_0 = arith.constant 0 : i32
    return %arg0, %c0_i32 : i32, i32
  }
}

</mosaic_0001>

<bundles_post_ra>
// kernel: tpu_custom_call.1
= control target key start
LH: loop header
LB: loop body
LE: loop exit
PB: predicated region body
PF: predicated region fallthrough
CT: control target
= control target key end

     0   :  { %9 = vsyncpa [#allocation3], 0  ;;  %s221_s0 = inlined_call_operand.hbm [shape: f32[8,256], index: 0, kind: input, shape index: {}]   ;;  %s222_s1 = inlined_call_operand.hbm [shape: f32[8,256], index: 1, kind: input, shape index: {}]   ;;  %s223_s2 = inlined_call_operand.hbm [shape: f32[8,256], index: 2, kind: output, shape index: {0}]   ;;  %s224_s3 = inlined_call_operand.hbm [shape: f32[8,256], index: 3, kind: output, shape index: {1}]  }
   0x1   :  { %10 = vsyncpa [#allocation6], 0 }
   0x2   :  { %11 = vsyncpa [#allocation4], 0 }
   0x3   :  { %12 = vsyncpa [#allocation9], 0  ;;  %s185_s12 = smov [#allocation2]   ;;  %s186_s14 = smov [#allocation5]  }
   0x4   :  { %s19_s13 = sshll.u32 %s185_s12, 4  ;;  %s29_s15 = sshll.u32 %s186_s14, 4  ;;  %s20_s13 = int_to_ptr.vmem [resolvable:$true] %s19_s13  ;;  %s30_s15 = int_to_ptr.vmem [resolvable:$true] %s29_s15 }
   0x5   :  { %s105_s16 = scalar_lea.vmem %s20_s13, 256  ;;  %p110_p1 = scmp.lt.s32.totalorder %s20_s13, %s20_s13 }
   0x6   :  { %p106_p0 = scmp.ne.s32.totalorder %s20_s13, %s105_s16  ;;  %p111_p2 = scmp.lt.s32.totalorder %s105_s16, %s105_s16 }
   0x8   :  { %p112_p3 = por %p111_p2, %p110_p1 }
   0xa   :  { %p113_p4 = pnand %p112_p3, %p106_p0 }
   0xc   :  { %116 = shalt.err (!%p113_p4)
}
   0xd   :  { %22 = dma.hbm_to_vmem [thread:$0]  %s221_s0, 256, %s20_s13, [#allocation3]  }
   0xe   :  { %s125_s19 = scalar_lea.vmem %s30_s15, 256  ;;  %p130_p6 = scmp.lt.s32.totalorder %s30_s15, %s30_s15 }
   0xf   :  { %p126_p5 = scmp.ne.s32.totalorder %s30_s15, %s125_s19  ;;  %p131_p7 = scmp.lt.s32.totalorder %s125_s19, %s125_s19 }
  0x11   :  { %p132_p8 = por %p131_p7, %p130_p6 }
  0x13   :  { %p133_p9 = pnand %p132_p8, %p126_p5 }
  0x15   :  { %136 = shalt.err (!%p133_p9)
}
  0x16   :  { %32 = dma.hbm_to_vmem [thread:$0]  %s222_s1, 256, %s30_s15, [#allocation6]  }
  0x17   :  { %177 = dma.done.wait [#allocation3], 256  }
  0x18   :  { %178 = vsyncadd [#allocation3], 4294967040 }
  0x19   :  { %179 = dma.done.wait [#allocation6], 256  }
  0x1a   :  { %180 = vsyncadd [#allocation6], 4294967040  ;;  %v39_v0 = vld [vmem:[#allocation2] sm:$0xff]  ;;  %v40_v1 = vld [vmem:[#allocation2 + $0x8] sm:$0xff]  ;;  %s187_s0 = smov [#allocation7]   ;;  %s188_s22 = smov [#allocation8]  }
  0x1b   :  { %v41_v2 = vld [vmem:[#allocation5] sm:$0xff]  ;;  %v42_v3 = vld [vmem:[#allocation5 + $0x8] sm:$0xff]  ;;  %v43_v4 = vadd.f32 %v40_v1, %v39_v0  ;;  %s67_s1 = sshll.u32 %s187_s0, 4  ;;  %s77_s23 = sshll.u32 %s188_s22, 4  ;;  %s68_s1 = int_to_ptr.vmem [resolvable:$true] %s67_s1  ;;  %s78_s23 = int_to_ptr.vmem [resolvable:$true] %s77_s23 }
  0x1c   :  { %v53_v5 = vsub.f32 %v39_v0, %v41_v2  ;;  %v54_v6 = vsub.f32 %v40_v1, %v42_v3  ;;  %v46_v7 = vadd.f32 %v42_v3, %v41_v2  ;;  %s137_s24 = scalar_lea.vmem %s68_s1, 256  ;;  %p142_p11 = scmp.lt.s32.totalorder %s68_s1, %s68_s1 }
  0x1d   :  { %44 = vadd.xlane.f32.xlu0 %v43_v4  ;;  %p138_p10 = scmp.ne.s32.totalorder %s68_s1, %s137_s24  ;;  %p143_p12 = scmp.lt.s32.totalorder %s137_s24, %s137_s24 }
  0x1f   :  { %p144_p13 = por %p143_p12, %p142_p11 }
  0x21   :  { %47 = vadd.xlane.f32.xlu0 %v46_v7  ;;  %p145_p0 = pnand %p144_p13, %p138_p10 }
  0xa6   :  { %v45_v8 = vpop.xlane.xlu0 %44 }
  0xaa   :  { %v48_v9 = vpop.xlane.xlu0 %47 }
  0xab   :  { %v49_v10 = vsub.f32 %v45_v8, %v48_v9 }
  0xad   :  { %v50_v11 = vmul.f32 0.00390625, %v49_v10 }
  0xaf   :  { %95 = vtanh.f32 %v50_v11 }
  0xbc   :  { %v96_v12 = vpop.eup %95 }
  0xbd   :  { %v52_v13 = vsub.f32 0.0, %v96_v12 }
  0xbf   :  { %v55_v14 = vmul.f32 %v53_v5, %v52_v13  ;;  %v56_v15 = vmul.f32 %v54_v6, %v52_v13 }
  0xc1   :  { %57 = vst [vmem:[#allocation7] sm:$0xff] %v55_v14  ;;  %58 = vst [vmem:[#allocation7 + $0x8] sm:$0xff] %v56_v15 }
  0xc2   :  { %59 = vst [vmem:[#allocation8] sm:$0xff] %v55_v14  ;;  %60 = vst [vmem:[#allocation8 + $0x8] sm:$0xff] %v56_v15 }
  0xc3   :  { %148 = shalt.err (!%p145_p0)
}
  0xc4   :  { %70 = dma.vmem_to_hbm [thread:$0]  %s68_s1, 256, %s223_s2, [#allocation4]  }
  0xc5   :  { %s157_s27 = scalar_lea.vmem %s78_s23, 256  ;;  %p162_p2 = scmp.lt.s32.totalorder %s78_s23, %s78_s23 }
  0xc6   :  { %p158_p1 = scmp.ne.s32.totalorder %s78_s23, %s157_s27  ;;  %p163_p3 = scmp.lt.s32.totalorder %s157_s27, %s157_s27 }
  0xc8   :  { %p164_p4 = por %p163_p3, %p162_p2 }
  0xca   :  { %p165_p5 = pnand %p164_p4, %p158_p1 }
  0xcc   :  { %168 = shalt.err (!%p165_p5)
}
  0xcd   :  { %80 = dma.vmem_to_hbm [thread:$0]  %s78_s23, 256, %s224_s3, [#allocation9]  }
  0xce   :  { %181 = dma.done.wait [#allocation4], 256  }
  0xcf   :  { %182 = vsyncadd [#allocation4], 4294967040 }
  0xd0   :  { %183 = dma.done.wait [#allocation9], 256  }
  0xd1   :  { %184 = vsyncadd [#allocation9], 4294967040 }
  0xd2   :  { %87 = vsyncpa [#allocation3], 1 }
  0xd3   :  { %88 = vsyncpa [#allocation6], 1 }
  0xd4   :  { %89 = vsyncpa [#allocation4], 1 }
  0xd5   :  { %90 = vsyncpa [#allocation9], 1 }

</bundles_post_ra>
